<compile_context>
chip_gen: v6e
topology: v6e:2x2x1
jax: 0.10.0
libtpu: 0.0.40
codegen_flags: <defaults>
</compile_context>

<pallas_src>
import math

import jax
import jax.numpy as jnp
from jax.experimental import pallas as pl
from jax.experimental.pallas import tpu as pltpu

LANE = 128      # lane width of a vreg
SUBLANE = 8     # fp32 sublane count of a vreg


def _round_up(n: int, m: int) -> int:
    return (n + m - 1) // m * m


def dqn_kernel(x_ref, w1_ref, b1_ref, w2_ref, b2_ref, out_ref):
    # fc1: upcast the bf16 activation tile to fp32 (cheap VPU op) and matmul
    # against the resident fp32 weights; accumulate, bias add and ReLU in fp32.
    x = x_ref[...].astype(jnp.float32)
    h = jnp.dot(x, w1_ref[...], preferred_element_type=jnp.float32)
    h = jnp.maximum(h + b1_ref[...], 0.0)
    # fc2: fp32 matmul + fp32 bias; only the final store narrows to bf16.
    q = jnp.dot(h, w2_ref[...], preferred_element_type=jnp.float32)
    out_ref[...] = (q + b2_ref[...]).astype(out_ref.dtype)


def prepare_params(w1, b1, w2, b2):
    """One-time zero-padding of PyTorch-equivalent fp32 params.

    Pads the hidden dim (100 -> 128) and the output dim (-> 128) so both
    matmuls and the store are lane-dense.  Zero padding keeps the math
    bit-identical (padded h columns are ReLU(0)=0, padded q columns are 0 and
    sliced off).  Everything stays fp32: these are tiny resident blocks, so
    bf16 would buy nothing while adding quantization error.
    """
    in_dim, hidden = w1.shape
    out_dim = w2.shape[1]
    hid_p = _round_up(hidden, LANE)
    out_p = _round_up(out_dim, LANE)

    w1p = jnp.zeros((in_dim, hid_p), jnp.float32).at[:, :hidden].set(w1)
    b1p = jnp.zeros((1, hid_p), jnp.float32).at[:, :hidden].set(
        jnp.asarray(b1, jnp.float32).reshape(1, hidden))
    w2p = jnp.zeros((hid_p, out_p), jnp.float32).at[:hidden, :out_dim].set(w2)
    b2p = jnp.zeros((1, out_p), jnp.float32).at[:, :out_dim].set(
        jnp.asarray(b2, jnp.float32).reshape(1, out_dim))

    return w1p, b1p, w2p, b2p, out_dim


def dqn_forward(x, w1p, b1p, w2p, b2p, out_dim, *, block_b=512):
    """Forward pass: returns [B, out_dim] fp32 Q-values."""
    B, in_dim = x.shape
    hid_p = w1p.shape[1]
    out_p = w2p.shape[1]

    # Pad the batch only to a sublane multiple (8), fusing the bf16 cast into
    # that single small copy.  When B is already aligned the only wrapper op
    # is the cast itself (which fuses with x's producer under jit).
    b_pad = _round_up(B, SUBLANE)
    if b_pad != B:
        xp = jnp.zeros((b_pad, in_dim), jnp.bfloat16).at[:B].set(
            x.astype(jnp.bfloat16))
    else:
        xp = x.astype(jnp.bfloat16)

    # Batch tile: large (512 default; 85%+ of HBM roofline vs 63% at 256) but
    # capped so the grid keeps >=2 steps whenever it can -- v7x only shards the
    # "parallel" axis across its 2 TensorCores if there is more than one step.
    tm = min(block_b, max(SUBLANE, _round_up(pl.cdiv(b_pad, 2), SUBLANE)))
    grid = (pl.cdiv(b_pad, tm),)   # ragged last block handled by Pallas

    flops = 2 * b_pad * (in_dim * hid_p + hid_p * out_p)
    bytes_accessed = (xp.size * xp.dtype.itemsize          # bf16 x stream
                      + w1p.size * 4 + w2p.size * 4        # resident fp32 weights
                      + b1p.size * 4 + b2p.size * 4        # resident fp32 biases
                      + b_pad * out_p * 2)                 # bf16 q stream

    q_pad = pl.pallas_call(
        dqn_kernel,
        out_shape=jax.ShapeDtypeStruct((b_pad, out_p), jnp.bfloat16),
        grid=grid,
        in_specs=[
            pl.BlockSpec((tm, in_dim), lambda i: (i, 0)),     # x: tiled over batch
            pl.BlockSpec((in_dim, hid_p), lambda i: (0, 0)),  # w1: resident
            pl.BlockSpec((1, hid_p), lambda i: (0, 0)),       # b1: resident
            pl.BlockSpec((hid_p, out_p), lambda i: (0, 0)),   # w2: resident
            pl.BlockSpec((1, out_p), lambda i: (0, 0)),       # b2: resident
        ],
        out_specs=pl.BlockSpec((tm, out_p), lambda i: (i, 0)),
        compiler_params=pltpu.CompilerParams(
            dimension_semantics=("parallel",)),
        cost_estimate=pl.CostEstimate(
            flops=flops, transcendentals=0, bytes_accessed=bytes_accessed),
    )(xp, w1p, b1p, w2p, b2p)

    # Layout plumbing only: drop pad rows / lane-pad columns, return fp32.
    return q_pad[:B, :out_dim].astype(jnp.float32)


def init_params(key, input_dim, output_dim, hidden=100):
    # Deterministic init mimicking PyTorch's Linear default:
    # U(-1/sqrt(fan_in), 1/sqrt(fan_in)) for both weights and biases.
    k1, k2, k3, k4 = jax.random.split(key, 4)
    bound1 = 1.0 / math.sqrt(input_dim)
    bound2 = 1.0 / math.sqrt(hidden)
    w1 = jax.random.uniform(k1, (input_dim, hidden), jnp.float32, -bound1, bound1)
    b1 = jax.random.uniform(k2, (1, hidden), jnp.float32, -bound1, bound1)
    w2 = jax.random.uniform(k3, (hidden, output_dim), jnp.float32, -bound2, bound2)
    b2 = jax.random.uniform(k4, (1, output_dim), jnp.float32, -bound2, bound2)
    return w1, b1, w2, b2


if __name__ == "__main__":
    key = jax.random.PRNGKey(0)
    kx, kp = jax.random.split(key)

    batch, input_dim, output_dim = 2, 16, 4
    x = jax.random.normal(kx, (batch, input_dim), jnp.float32)
    w1, b1, w2, b2 = init_params(kp, input_dim, output_dim)

    w1p, b1p, w2p, b2p, out_dim = prepare_params(w1, b1, w2, b2)
    q = dqn_forward(x, w1p, b1p, w2p, b2p, out_dim)
    jax.block_until_ready(q)
    assert q.shape == (batch, output_dim)
    assert q.dtype == jnp.float32

    # Reference 1: mirror the kernel's arithmetic (bf16-quantized x, fp32
    # weights/accumulate); remaining delta is just the bf16 output store.
    xr = x.astype(jnp.bfloat16).astype(jnp.float32)
    h_ref = jnp.maximum(xr @ w1 + b1, 0.0)
    ref_mirror = h_ref @ w2 + b2
    assert jnp.allclose(q, ref_mirror, atol=2e-2, rtol=2e-2)

    # Reference 2: original full-fp32 PyTorch-equivalent forward; the only
    # deltas are the bf16 quantization of the streamed x and stored q.
    ref_fp32 = jnp.maximum(x @ w1 + b1, 0.0) @ w2 + b2
    assert jnp.allclose(q, ref_fp32, atol=5e-2, rtol=5e-2)

    print("KERNEL_OK")
</pallas_src>

<mosaic_0001>
module attributes {stable_mosaic.version = 11 : i64} {
  func.func @dqn_kernel(%arg0: i32, %arg1: memref<8x16xbf16, #tpu.memory_space<vmem>>, %arg2: memref<16x128xf32, #tpu.memory_space<vmem>>, %arg3: memref<1x128xf32, #tpu.memory_space<vmem>>, %arg4: memref<128x128xf32, #tpu.memory_space<vmem>>, %arg5: memref<1x128xf32, #tpu.memory_space<vmem>>, %arg6: memref<8x128xbf16, #tpu.memory_space<vmem>>) attributes {dimension_semantics = [#tpu.dimension_semantics<parallel>], iteration_bounds = array<i64: 1>, scalar_prefetch = 0 : i64, scratch_operands = 0 : i64, tpu.core_type = #tpu.core_type<tc>, window_params = [{transform_indices = @transform_0, window_bounds = array<i64: 8, 16>}, {pipeline_mode = #tpu.pipeline_mode<synchronous>, transform_indices = @transform_1, window_bounds = array<i64: 16, 128>}, {pipeline_mode = #tpu.pipeline_mode<synchronous>, transform_indices = @transform_2, window_bounds = array<i64: 1, 128>}, {pipeline_mode = #tpu.pipeline_mode<synchronous>, transform_indices = @transform_3, window_bounds = array<i64: 128, 128>}, {pipeline_mode = #tpu.pipeline_mode<synchronous>, transform_indices = @transform_4, window_bounds = array<i64: 1, 128>}, {transform_indices = @transform_5, window_bounds = array<i64: 8, 128>}]} {
    %c0 = arith.constant 0 : index
    %c0_0 = arith.constant 0 : index
    %0 = vector.load %arg1[%c0, %c0_0] : memref<8x16xbf16, #tpu.memory_space<vmem>>, vector<8x16xbf16>
    %1 = arith.extf %0 : vector<8x16xbf16> to vector<8x16xf32>
    %c0_1 = arith.constant 0 : index
    %c0_2 = arith.constant 0 : index
    %2 = vector.load %arg2[%c0_1, %c0_2] : memref<16x128xf32, #tpu.memory_space<vmem>>, vector<16x128xf32>
    %cst = arith.constant dense<0.000000e+00> : vector<8x128xf32>
    %3 = tpu.matmul %1, %2, %cst {dimension_numbers = #tpu.dot_dimension_numbers<[1], [0], [0], [1], [0, 0, 1, 1], [], []>} : vector<8x16xf32>, vector<16x128xf32>, vector<8x128xf32> -> vector<8x128xf32>
    %c0_3 = arith.constant 0 : index
    %c0_4 = arith.constant 0 : index
    %4 = vector.load %arg3[%c0_3, %c0_4] : memref<1x128xf32, #tpu.memory_space<vmem>>, vector<1x128xf32>
    %5 = vector.broadcast %4 : vector<1x128xf32> to vector<8x128xf32>
    %6 = arith.addf %3, %5 : vector<8x128xf32>
    %cst_5 = arith.constant 0.000000e+00 : f32
    %7 = vector.broadcast %cst_5 : f32 to vector<8x128xf32>
    %8 = arith.maximumf %6, %7 : vector<8x128xf32>
    %c0_6 = arith.constant 0 : index
    %c0_7 = arith.constant 0 : index
    %9 = vector.load %arg4[%c0_6, %c0_7] : memref<128x128xf32, #tpu.memory_space<vmem>>, vector<128x128xf32>
    %cst_8 = arith.constant dense<0.000000e+00> : vector<8x128xf32>
    %10 = tpu.matmul %8, %9, %cst_8 {dimension_numbers = #tpu.dot_dimension_numbers<[1], [0], [0], [1], [0, 0, 1, 1], [], []>} : vector<8x128xf32>, vector<128x128xf32>, vector<8x128xf32> -> vector<8x128xf32>
    %c0_9 = arith.constant 0 : index
    %c0_10 = arith.constant 0 : index
    %11 = vector.load %arg5[%c0_9, %c0_10] : memref<1x128xf32, #tpu.memory_space<vmem>>, vector<1x128xf32>
    %12 = vector.broadcast %11 : vector<1x128xf32> to vector<8x128xf32>
    %13 = arith.addf %10, %12 : vector<8x128xf32>
    %14 = arith.truncf %13 : vector<8x128xf32> to vector<8x128xbf16>
    %c0_11 = arith.constant 0 : index
    %c0_12 = arith.constant 0 : index
    %15 = vector.load %arg6[%c0_11, %c0_12] : memref<8x128xbf16, #tpu.memory_space<vmem>>, vector<8x128xbf16>
    tpu.vector_store %arg6[%c0_11, %c0_12], %14 {strides = array<i32>} : memref<8x128xbf16, #tpu.memory_space<vmem>>, vector<8x128xbf16>,
    return
  }
  func.func @transform_0(%arg0: i32) -> (i32, i32) {
    %c0_i32 = arith.constant 0 : i32
    %c0_i32_0 = arith.constant 0 : i32
    return %arg0, %c0_i32 : i32, i32
  }
  func.func @transform_1(%arg0: i32) -> (i32, i32) {
    %c0_i32 = arith.constant 0 : i32
    %c0_i32_0 = arith.constant 0 : i32
    %c0_i32_1 = arith.constant 0 : i32
    return %c0_i32, %c0_i32_0 : i32, i32
  }
  func.func @transform_2(%arg0: i32) -> (i32, i32) {
    %c0_i32 = arith.constant 0 : i32
    %c0_i32_0 = arith.constant 0 : i32
    %c0_i32_1 = arith.constant 0 : i32
    return %c0_i32, %c0_i32_0 : i32, i32
  }
  func.func @transform_3(%arg0: i32) -> (i32, i32) {
    %c0_i32 = arith.constant 0 : i32
    %c0_i32_0 = arith.constant 0 : i32
    %c0_i32_1 = arith.constant 0 : i32
    return %c0_i32, %c0_i32_0 : i32, i32
  }
  func.func @transform_4(%arg0: i32) -> (i32, i32) {
    %c0_i32 = arith.constant 0 : i32
    %c0_i32_0 = arith.constant 0 : i32
    %c0_i32_1 = arith.constant 0 : i32
    return %c0_i32, %c0_i32_0 : i32, i32
  }
  func.func @transform_5(%arg0: i32) -> (i32, i32) {
    %c0_i32 = arith.constant 0 : i32
    %c0_i32_0 = arith.constant 0 : i32
    return %arg0, %c0_i32 : i32, i32
  }
}

</mosaic_0001>

<bundles_post_ra>
// kernel: tpu_custom_call.1
= control target key start
LH: loop header
LB: loop body
LE: loop exit
PB: predicated region body
PF: predicated region fallthrough
CT: control target
= control target key end

     0   :  { %10 = vsyncpa [#allocation3], 0  ;;  %s472_s0 = inlined_call_operand.hbm [shape: bf16[8,16], index: 0, kind: input, shape index: {}]   ;;  %s473_s1 = inlined_call_operand.hbm [shape: f32[16,128], index: 1, kind: input, shape index: {}]   ;;  %s474_s2 = inlined_call_operand.vmem [shape: f32[1,128], index: 2, kind: input, shape index: {}]   ;;  %s475_s3 = inlined_call_operand.hbm [shape: f32[128,128], index: 3, kind: input, shape index: {}]   ;;  %s476_s4 = inlined_call_operand.vmem [shape: f32[1,128], index: 4, kind: input, shape index: {}]   ;;  %s477_s5 = inlined_call_operand.hbm [shape: bf16[8,128], index: 5, kind: output, shape index: {}]  }
   0x1   :  { %11 = vsyncpa [#allocation6], 0 }
   0x2   :  { %12 = vsyncpa [#allocation4], 0  ;;  %s416_s18 = smov [#allocation5]  }
   0x3   :  { %s28_s19 = sshll.u32 %s416_s18, 4  ;;  %s29_s19 = int_to_ptr.vmem [resolvable:$true] %s28_s19 }
   0x4   :  { %s338_s20 = scalar_lea.vmem %s29_s19, 256  ;;  %p343_p1 = scmp.lt.s32.totalorder %s29_s19, %s29_s19 }
   0x5   :  { %p339_p0 = scmp.ne.s32.totalorder %s29_s19, %s338_s20  ;;  %p344_p2 = scmp.lt.s32.totalorder %s338_s20, %s338_s20 }
   0x7   :  { %p345_p3 = por %p344_p2, %p343_p1 }
   0x9   :  { %p346_p4 = pnand %p345_p3, %p339_p0 }
   0xb   :  { %349 = shalt.err (!%p346_p4)
}
   0xc   :  { %s417_s21 = smov 128   ;;  %s418_s22 = smov 8  }
   0xd   :  { %34 = dma.hbm_to_vmem [thread:$0]  %s473_s1, 256, %s29_s19, [#allocation6], %s417_s21, %s417_s21, %s418_s22  }
   0xe   :  { %s419_s25 = smov [#allocation2]   ;;  %s420_s27 = smov [#allocation7]  }
   0xf   :  { %s19_s26 = sshll.u32 %s419_s25, 4  ;;  %s42_s28 = sshll.u32 %s420_s27, 4  ;;  %s20_s26 = int_to_ptr.vmem [resolvable:$true] %s19_s26  ;;  %s43_s28 = int_to_ptr.vmem [resolvable:$true] %s42_s28 }
  0x10   :  { %s358_s29 = scalar_lea.vmem %s20_s26, 64  ;;  %p363_p6 = scmp.lt.s32.totalorder %s20_s26, %s20_s26 }
  0x11   :  { %p359_p5 = scmp.ne.s32.totalorder %s20_s26, %s358_s29  ;;  %p364_p7 = scmp.lt.s32.totalorder %s358_s29, %s358_s29 }
  0x13   :  { %p365_p8 = por %p364_p7, %p363_p6 }
  0x15   :  { %p366_p9 = pnand %p365_p8, %p359_p5 }
  0x17   :  { %369 = shalt.err (!%p366_p9)
}
  0x18   :  { %22 = dma.hbm_to_vmem [thread:$0]  %s472_s0, 64, %s20_s26, [#allocation3]  }
  0x19   :  { %s378_s7 = scalar_lea.vmem %s43_s28, 2048  ;;  %p383_p11 = scmp.lt.s32.totalorder %s43_s28, %s43_s28 }
  0x1a   :  { %p379_p10 = scmp.ne.s32.totalorder %s43_s28, %s378_s7  ;;  %p384_p12 = scmp.lt.s32.totalorder %s378_s7, %s378_s7 }
  0x1c   :  { %p385_p13 = por %p384_p12, %p383_p11 }
  0x1e   :  { %p386_p0 = pnand %p385_p13, %p379_p10 }
  0x20   :  { %389 = shalt.err (!%p386_p0)
}
  0x21   :  { %48 = dma.hbm_to_vmem [thread:$0]  %s475_s3, 2048, %s43_s28, [#allocation6], %s417_s21, %s417_s21, %s418_s22  }
  0x22   :  { %410 = dma.done.wait [#allocation3], 64  }
  0x23   :  { %411 = vsyncadd [#allocation3], 4294967232 }
  0x24   :  { %412 = dma.done.wait [#allocation6], 2304  }
  0x25   :  { %413 = vsyncadd [#allocation6], 4294964992  ;;  %v421_v0 = vmov 0.0   ;;  %vm422_vm0 = vmmov 0   ;;  %v63_v1 = vld [vmem:[#allocation5 + $0x8] sm:$0xff]  ;;  %v62_v2 = vld [vmem:[#allocation5] sm:$0xff] }
  0x26   :  { %280 = vmatprep.subr.mxu0 %v421_v0  ;;  %284 = vmatprep.mubr.msk.f32.mxu0 %vm422_vm0, %v421_v0  ;;  %v60_v3 = vld [vmem:[#allocation2] sm:$0xf]  ;;  %vm71_vm1 = vcmask 130048   ;;  %v161_v5 = vld [vmem:[#allocation7 + $0x78] sm:$0xff]  ;;  %v160_v6 = vld [vmem:[#allocation7 + $0x70] sm:$0xff]  ;;  %s423_s11 = smov [#allocation8]  }
  0x27   :  { %287 = vmatprep.subr.mxu1 %v421_v0  ;;  %319 = vmatprep.mubr.msk.f32.mxu1 %vm422_vm0, %v421_v0  ;;  %v61_v4 = vunpack.c.l.bf16 %v60_v3  ;;  %v159_v7 = vld [vmem:[#allocation7 + $0x68] sm:$0xff]  ;;  %v158_v8 = vld [vmem:[#allocation7 + $0x60] sm:$0xff]  ;;  %v157_v9 = vld [vmem:[#allocation7 + $0x58] sm:$0xff]  ;;  %s247_s12 = sshll.u32 %s423_s11, 4  ;;  %s248_s12 = int_to_ptr.vmem [resolvable:$true] %s247_s12 }
  0x28   :  { %281 = vmatpush3.msra.mxu0 %v63_v1  ;;  %288 = vmatpush3.msra.mxu1 %v161_v5  ;;  %v156_v10 = vld [vmem:[#allocation7 + $0x50] sm:$0xff]  ;;  %v155_v11 = vld [vmem:[#allocation7 + $0x48] sm:$0xff]  ;;  %v154_v12 = vld [vmem:[#allocation7 + $0x40] sm:$0xff]  ;;  %s390_s13 = scalar_lea.vmem %s248_s12, 64  ;;  %p395_p2 = scmp.lt.s32.totalorder %s248_s12, %s248_s12 }
  0x29   :  { %282 = vmatprep.subr.mxu0 %v421_v0  ;;  %289 = vmatprep.subr.mxu1 %v421_v0  ;;  %v153_v13 = vld [vmem:[#allocation7 + $0x38] sm:$0xff]  ;;  %v152_v14 = vld [vmem:[#allocation7 + $0x30] sm:$0xff]  ;;  %v151_v15 = vld [vmem:[#allocation7 + $0x28] sm:$0xff]  ;;  %p391_p1 = scmp.ne.s32.totalorder %s248_s12, %s390_s13  ;;  %p396_p3 = scmp.lt.s32.totalorder %s390_s13, %s390_s13 }
  0x2a   :  { %283 = vmatpush3.msra.mxu0 %v62_v2  ;;  %290 = vmatpush3.msra.mxu1 %v160_v6  ;;  %v150_v16 = vld [vmem:[#allocation7 + $0x20] sm:$0xff]  ;;  %v149_v17 = vld [vmem:[#allocation7 + $0x18] sm:$0xff]  ;;  %v148_v18 = vld [vmem:[#allocation7 + $0x10] sm:$0xff] }
  0x2b   :  { %285 = vmatmul.mubr.msk.f32.vlgmr.msra.gmra.mxu0 %vm71_vm1, %v61_v4  ;;  %291 = vmatprep.subr.mxu1 %v421_v0  ;;  %v147_v19 = vld [vmem:[#allocation7 + $0x8] sm:$0xff]  ;;  %v146_v20 = vld [vmem:[#allocation7] sm:$0xff]  ;;  %p397_p4 = por %p396_p3, %p395_p2 }
  0x2c   :  { %292 = vmatpush3.msra.mxu1 %v159_v7  ;;  %v257_v21 = vld [vmem:[%s474_s2] ss:$0 sm:$0xff] }
  0x2d   :  { %293 = vmatprep.subr.mxu1 %v421_v0  ;;  %v259_v26 = vld [vmem:[%s476_s4] ss:$0 sm:$0xff]  ;;  %p398_p5 = pnand %p397_p4, %p391_p1 }
  0x2e   :  { %294 = vmatpush3.msra.mxu1 %v158_v8 }
  0x2f   :  { %295 = vmatprep.subr.mxu1 %v421_v0 }
  0x30   :  { %296 = vmatpush3.msra.mxu1 %v157_v9 }
  0x31   :  { %297 = vmatprep.subr.mxu1 %v421_v0 }
  0x32   :  { %298 = vmatpush3.msra.mxu1 %v156_v10 }
  0x33   :  { %299 = vmatprep.subr.mxu1 %v421_v0 }
  0x34   :  { %300 = vmatpush3.msra.mxu1 %v155_v11 }
  0x35   :  { %301 = vmatprep.subr.mxu1 %v421_v0 }
  0x36   :  { %302 = vmatpush3.msra.mxu1 %v154_v12 }
  0x37   :  { %303 = vmatprep.subr.mxu1 %v421_v0 }
  0x38   :  { %304 = vmatpush3.msra.mxu1 %v153_v13 }
  0x39   :  { %305 = vmatprep.subr.mxu1 %v421_v0 }
  0x3a   :  { %306 = vmatpush3.msra.mxu1 %v152_v14 }
  0x3b   :  { %307 = vmatprep.subr.mxu1 %v421_v0 }
  0x3c   :  { %308 = vmatpush3.msra.mxu1 %v151_v15 }
  0x3d   :  { %309 = vmatprep.subr.mxu1 %v421_v0 }
  0x3e   :  { %310 = vmatpush3.msra.mxu1 %v150_v16 }
  0x3f   :  { %311 = vmatprep.subr.mxu1 %v421_v0 }
  0x40   :  { %312 = vmatpush3.msra.mxu1 %v149_v17 }
  0x41   :  { %313 = vmatprep.subr.mxu1 %v421_v0 }
  0x42   :  { %314 = vmatpush3.msra.mxu1 %v148_v18 }
  0x43   :  { %315 = vmatprep.subr.mxu1 %v421_v0 }
  0x44   :  { %316 = vmatpush3.msra.mxu1 %v147_v19 }
  0x45   :  { %317 = vmatprep.subr.mxu1 %v421_v0 }
  0x46   :  { %318 = vmatpush3.msra.mxu1 %v146_v20 }
  0xeb   :  { %v141_v22 = vpop.f32.mrf.mxu0 }
  0xec   :  { %v142_v23 = vadd.f32 %v257_v21, %v141_v22 }
  0xed   :  { %v286_v24 = vpop.f32.mrf.mxu0 }
  0xee   :  { %v145_v25 = vmax.f32 %v142_v23, 0.0 }
  0xf0   :  { %320 = vmatmul.mubr.f32.vlgmr.msra.gmra.mxu1 %v145_v25 }
 0x1b0   :  { %v235_v27 = vpop.f32.mrf.mxu1 }
 0x1b1   :  { %v236_v28 = vadd.f32 %v259_v26, %v235_v27 }
 0x1b2   :  { %v321_v29 = vpop.f32.mrf.mxu1 }
 0x1b3   :  { %v239_v30 = vpack.c.bf16 %v236_v28, %v236_v28 }
 0x1b5   :  { %240 = vst [vmem:[#allocation8] sm:$0xf] %v239_v30 }
 0x1b6   :  { %401 = shalt.err (!%p398_p5)
}
 0x1b7   :  { %250 = dma.vmem_to_hbm [thread:$0]  %s248_s12, 64, %s477_s5, [#allocation4]  }
 0x1b8   :  { %414 = dma.done.wait [#allocation4], 64  }
 0x1b9   :  { %415 = vsyncadd [#allocation4], 4294967232 }
 0x1ba   :  { %254 = vsyncpa [#allocation3], 1 }
 0x1bb   :  { %255 = vsyncpa [#allocation6], 1 }
 0x1bc   :  { %256 = vsyncpa [#allocation4], 1 }

</bundles_post_ra>
